<compile_context>
chip_gen: v5e
topology: v5e:2x2
jax: 0.10.0
libtpu: 0.0.40
codegen_flags: <defaults>
</compile_context>

<pallas_src>
import jax
import jax.numpy as jnp
import numpy as np
from jax.experimental import pallas as pl
from jax.experimental.pallas import tpu as pltpu


def voting_kernel(xyz_ref, x_ref,
                  w1_ref, t1_ref,
                  w2_ref, t2_ref,
                  w3_ref, b3_ref,
                  vote_xyz_ref, vote_feat_ref):
    # xyz_ref  : (TILE_N, 3) f32   seed coordinates (seed-major, as in the module)
    # x_ref    : (C, TILE_N) f32   seed features   (channels-first)
    # w1,w2    : (C, C)      bf16  conv weights with BN scale folded in
    # t1,t2    : (C, 1)      f32   folded conv-bias + BN shift
    # w3/b3    : (C+8, C) bf16 / (C+8, 1) f32   fused conv3:
    #            rows [0,C) -> feature residual, rows [C,C+3) -> xyz offset,
    #            rows [C+3,C+8) -> zero padding (sublane alignment)
    C = x_ref.shape[0]

    x = x_ref[...].astype(jnp.bfloat16)                 # cast only; f32 not kept live

    # conv1 + bn1 + relu   (BN scale folded into w1, shift in t1)
    h1 = jnp.dot(w1_ref[...], x, preferred_element_type=jnp.float32)
    h1 = jnp.maximum(h1 + t1_ref[...], 0.0).astype(jnp.bfloat16)

    # conv2 + bn2 + relu
    h2 = jnp.dot(w2_ref[...], h1, preferred_element_type=jnp.float32)
    h2 = jnp.maximum(h2 + t2_ref[...], 0.0).astype(jnp.bfloat16)

    # conv3: one fused matmul over the packed (C+8, C) weight
    out3 = jnp.dot(w3_ref[...], h2, preferred_element_type=jnp.float32) + b3_ref[...]

    # feature residual: rows [0, C) — lane-dense store; re-read x_ref (cheap vld)
    vote_feat_ref[...] = x_ref[...] + out3[:C, :]       # (C, TILE_N)

    # xyz offset: rows [C, C+8) form an aligned (8, TILE_N) slab; transpose on
    # the XLU and keep the first 3 lanes -> (TILE_N, 3), add seed_xyz in place.
    off_t = jnp.transpose(out3[C:, :])                  # (TILE_N, 8)
    vote_xyz_ref[...] = xyz_ref[...] + off_t[:, :3]     # (TILE_N, 3)


def _choose_tile_n(n, c):
    """Largest seed-axis slab (N itself, or a multiple-of-128 divisor of N)
    whose double-buffered VMEM footprint stays under ~24 MiB."""
    # per-seed-column bytes: feature in+out (f32, x2 buffers) + xyz in+out
    # (padded to 128 lanes, x2 buffers) + in-kernel intermediates (h1,h2,out3).
    per_col = 2 * 2 * (c * 4) + 2 * 2 * (128 * 4) + 2 * c * 2 + (c + 8) * 4
    budget = 24 * 1024 * 1024
    if n * per_col <= budget:
        return n
    t = min(n, budget // per_col) // 128 * 128
    while t >= 128:
        if n % t == 0:
            return t
        t -= 128
    return n  # no suitable divisor; fall back to full extent


def voting_module_forward(seed_xyz, seed_features, params):
    """seed_xyz: (B, N, 3) f32; seed_features: (B, C, N) f32
       -> vote_xyz (B, N, 3) f32, vote_features (B, C, N) f32."""
    B, N, _ = seed_xyz.shape
    C = seed_features.shape[1]
    w1, t1, w2, t2, w3p, b3p = params
    C_pad = w3p.shape[0]                                 # = C + 8

    tile_n = _choose_tile_n(N, C)
    n_tiles = N // tile_n

    if n_tiles > 1:
        grid = (B, n_tiles)
        feat_map = lambda b, j: (b, 0, j)                # (B, C, N) blocks
        xyz_map = lambda b, j: (b, j, 0)                 # (B, N, 3) blocks
        const_map = lambda b, j: (0, 0)                  # VMEM-resident weights
        dims = ("parallel", "parallel")
    else:
        grid = (B,)                                      # N axis collapsed
        feat_map = lambda b: (b, 0, 0)
        xyz_map = lambda b: (b, 0, 0)
        const_map = lambda b: (0, 0)
        dims = ("parallel",)                             # megacore over batch

    flops = 2 * B * N * (2 * C * C + C_pad * C)
    bytes_accessed = (2 * B * N * 3 * 4 + 2 * B * N * C * 4
                      + (2 * C * C + C_pad * C) * 2 + (2 * C + C_pad) * 4)
    cost = pl.CostEstimate(flops=flops, transcendentals=0,
                           bytes_accessed=bytes_accessed)

    grid_spec = pltpu.PrefetchScalarGridSpec(
        num_scalar_prefetch=0,
        grid=grid,
        in_specs=[
            pl.BlockSpec((None, tile_n, 3), xyz_map),    # seed_xyz   (B,N,3)
            pl.BlockSpec((None, C, tile_n), feat_map),   # seed_feats (B,C,N)
            pl.BlockSpec((C, C), const_map),             # w1 (folded)
            pl.BlockSpec((C, 1), const_map),             # t1
            pl.BlockSpec((C, C), const_map),             # w2 (folded)
            pl.BlockSpec((C, 1), const_map),             # t2
            pl.BlockSpec((C_pad, C), const_map),         # w3 (fused / padded)
            pl.BlockSpec((C_pad, 1), const_map),         # b3 (fused / padded)
        ],
        out_specs=[
            pl.BlockSpec((None, tile_n, 3), xyz_map),    # vote_xyz   (B,N,3)
            pl.BlockSpec((None, C, tile_n), feat_map),   # vote_feats (B,C,N)
        ],
    )

    out_shapes = (
        jax.ShapeDtypeStruct((B, N, 3), jnp.float32),
        jax.ShapeDtypeStruct((B, C, N), jnp.float32),
    )

    vote_xyz, vote_features = pl.pallas_call(
        voting_kernel,
        out_shape=out_shapes,
        grid_spec=grid_spec,
        compiler_params=pltpu.CompilerParams(
            dimension_semantics=dims,
            vmem_limit_bytes=32 * 1024 * 1024),
        cost_estimate=cost,
    )(seed_xyz, seed_features, w1, t1, w2, t2, w3p, b3p)

    return vote_xyz, vote_features


def make_params(key, C):
    """Deterministic synthetic parameters matching the PyTorch module shapes.
    Conv1d weights (O, I, 1) are squeezed; BN (eval mode) scale is folded into
    the conv weights, BN shift + conv bias into per-channel shifts.  conv3 is
    repacked into a single sublane-padded (C+8, C) weight block."""
    eps = 1e-5
    ks = jax.random.split(key, 14)

    def conv(kw, kb, o, i):
        w = jax.random.normal(kw, (o, i), jnp.float32) * 0.1
        b = jax.random.normal(kb, (o,), jnp.float32) * 0.1
        return w, b

    def bn(kg, kb, km, kv, c):
        gamma = 1.0 + 0.1 * jax.random.normal(kg, (c,), jnp.float32)
        beta = 0.05 * jax.random.normal(kb, (c,), jnp.float32)
        mean = 0.1 * jax.random.normal(km, (c,), jnp.float32)
        var = 1.0 + 0.1 * jnp.abs(jax.random.normal(kv, (c,), jnp.float32))
        return gamma, beta, mean, var

    w1, b1 = conv(ks[0], ks[1], C, C)
    w2, b2 = conv(ks[2], ks[3], C, C)
    w3, b3 = conv(ks[4], ks[5], 3 + C, C)
    g1, be1, m1, v1 = bn(ks[6], ks[7], ks[8], ks[9], C)
    g2, be2, m2, v2 = bn(ks[10], ks[11], ks[12], ks[13], C)

    # fold: bn(conv(x)) = (w * sc[:,None]) @ x + ((b - m) * sc + beta)
    sc1 = g1 / jnp.sqrt(v1 + eps)
    sc2 = g2 / jnp.sqrt(v2 + eps)
    w1f = (w1 * sc1[:, None]).astype(jnp.bfloat16)
    w2f = (w2 * sc2[:, None]).astype(jnp.bfloat16)
    t1 = ((b1 - m1) * sc1 + be1)[:, None].astype(jnp.float32)
    t2 = ((b2 - m2) * sc2 + be2)[:, None].astype(jnp.float32)

    # conv3 fused packing: rows [0,C) = feature-residual rows (torch rows 3:),
    # rows [C,C+3) = xyz-offset rows (torch rows 0:3), rows [C+3,C+8) = zeros.
    C_pad = C + 8
    w3p = (jnp.zeros((C_pad, C), jnp.float32)
           .at[:C].set(w3[3:])
           .at[C:C + 3].set(w3[:3])).astype(jnp.bfloat16)
    b3p = (jnp.zeros((C_pad,), jnp.float32)
           .at[:C].set(b3[3:])
           .at[C:C + 3].set(b3[:3]))[:, None].astype(jnp.float32)

    params = (w1f, t1, w2f, t2, w3p, b3p)
    raw = (w1, b1, w2, b2, w3, b3, g1, be1, m1, v1, g2, be2, m2, v2, eps)
    return params, raw


def reference_forward(seed_xyz, seed_features, raw):
    """Pure-JAX f32 reference mirroring the PyTorch forward (BN in eval mode)."""
    (w1, b1, w2, b2, w3, b3, g1, be1, m1, v1, g2, be2, m2, v2, eps) = raw

    def conv1d(x, w, b):        # x: (B, Cin, N), w: (O, Cin)
        return jnp.einsum("oc,bcn->bon", w, x) + b[None, :, None]

    def bn_eval(x, g, be, m, v):
        return (x - m[None, :, None]) / jnp.sqrt(v[None, :, None] + eps) \
               * g[None, :, None] + be[None, :, None]

    net = jax.nn.relu(bn_eval(conv1d(seed_features, w1, b1), g1, be1, m1, v1))
    net = jax.nn.relu(bn_eval(conv1d(net, w2, b2), g2, be2, m2, v2))
    net = conv1d(net, w3, b3)                            # (B, 3+C, N)
    net = jnp.transpose(net, (0, 2, 1))                  # (B, N, 3+C)
    vote_xyz = seed_xyz + net[:, :, 0:3]
    vote_features = jnp.transpose(seed_features, (0, 2, 1)) + net[:, :, 3:]
    return vote_xyz, jnp.transpose(vote_features, (0, 2, 1))


if __name__ == "__main__":
    B, N, C = 2, 384, 32          # batch, num_seed, seed_feature_dim (small)

    key = jax.random.PRNGKey(0)
    k_xyz, k_feat, k_par = jax.random.split(key, 3)
    seed_xyz = jax.random.normal(k_xyz, (B, N, 3), jnp.float32)
    seed_features = jax.random.normal(k_feat, (B, C, N), jnp.float32)

    params, raw = make_params(k_par, C)

    vote_xyz, vote_features = voting_module_forward(seed_xyz, seed_features, params)
    jax.block_until_ready((vote_xyz, vote_features))

    # bf16 matmul operands (f32 accumulation) -> loosened tolerance vs f32 ref
    ref_xyz, ref_feat = reference_forward(seed_xyz, seed_features, raw)
    np.testing.assert_allclose(np.asarray(vote_xyz), np.asarray(ref_xyz),
                               rtol=5e-2, atol=5e-2)
    np.testing.assert_allclose(np.asarray(vote_features), np.asarray(ref_feat),
                               rtol=5e-2, atol=5e-2)

    assert vote_xyz.shape == (B, N, 3)
    assert vote_features.shape == (B, C, N)
    print("KERNEL_OK")
</pallas_src>

<mosaic_0001>
module attributes {stable_mosaic.version = 11 : i64} {
  func.func @voting_kernel(%arg0: i32, %arg1: memref<1x384x3xf32, #tpu.memory_space<vmem>>, %arg2: memref<1x32x384xf32, #tpu.memory_space<vmem>>, %arg3: memref<32x32xbf16, #tpu.memory_space<vmem>>, %arg4: memref<32x1xf32, #tpu.memory_space<vmem>>, %arg5: memref<32x32xbf16, #tpu.memory_space<vmem>>, %arg6: memref<32x1xf32, #tpu.memory_space<vmem>>, %arg7: memref<40x32xbf16, #tpu.memory_space<vmem>>, %arg8: memref<40x1xf32, #tpu.memory_space<vmem>>, %arg9: memref<1x384x3xf32, #tpu.memory_space<vmem>>, %arg10: memref<1x32x384xf32, #tpu.memory_space<vmem>>) attributes {dimension_semantics = [#tpu.dimension_semantics<parallel>], iteration_bounds = array<i64: 2>, scalar_prefetch = 0 : i64, scratch_operands = 0 : i64, tpu.core_type = #tpu.core_type<tc>, window_params = [{transform_indices = @transform_0, window_bounds = array<i64: 1, 384, 3>}, {transform_indices = @transform_1, window_bounds = array<i64: 1, 32, 384>}, {pipeline_mode = #tpu.pipeline_mode<synchronous>, transform_indices = @transform_2, window_bounds = array<i64: 32, 32>}, {pipeline_mode = #tpu.pipeline_mode<synchronous>, transform_indices = @transform_3, window_bounds = array<i64: 32, 1>}, {pipeline_mode = #tpu.pipeline_mode<synchronous>, transform_indices = @transform_4, window_bounds = array<i64: 32, 32>}, {pipeline_mode = #tpu.pipeline_mode<synchronous>, transform_indices = @transform_5, window_bounds = array<i64: 32, 1>}, {pipeline_mode = #tpu.pipeline_mode<synchronous>, transform_indices = @transform_6, window_bounds = array<i64: 40, 32>}, {pipeline_mode = #tpu.pipeline_mode<synchronous>, transform_indices = @transform_7, window_bounds = array<i64: 40, 1>}, {transform_indices = @transform_8, window_bounds = array<i64: 1, 384, 3>}, {transform_indices = @transform_9, window_bounds = array<i64: 1, 32, 384>}]} {
    %c0 = arith.constant 0 : index
    %c0_0 = arith.constant 0 : index
    %c0_1 = arith.constant 0 : index
    %0 = vector.load %arg2[%c0, %c0_0, %c0_1] : memref<1x32x384xf32, #tpu.memory_space<vmem>>, vector<1x32x384xf32>
    %1 = vector.shape_cast %0 : vector<1x32x384xf32> to vector<32x384xf32>
    %2 = arith.truncf %1 : vector<32x384xf32> to vector<32x384xbf16>
    %c0_2 = arith.constant 0 : index
    %c0_3 = arith.constant 0 : index
    %3 = vector.load %arg3[%c0_2, %c0_3] : memref<32x32xbf16, #tpu.memory_space<vmem>>, vector<32x32xbf16>
    %cst = arith.constant dense<0.000000e+00> : vector<32x384xf32>
    %4 = tpu.matmul %3, %2, %cst {dimension_numbers = #tpu.dot_dimension_numbers<[1], [0], [0], [1], [0, 0, 1, 1], [], []>} : vector<32x32xbf16>, vector<32x384xbf16>, vector<32x384xf32> -> vector<32x384xf32>
    %c0_4 = arith.constant 0 : index
    %c0_5 = arith.constant 0 : index
    %5 = vector.load %arg4[%c0_4, %c0_5] : memref<32x1xf32, #tpu.memory_space<vmem>>, vector<32x1xf32>
    %6 = vector.broadcast %5 : vector<32x1xf32> to vector<32x384xf32>
    %7 = arith.addf %4, %6 : vector<32x384xf32>
    %cst_6 = arith.constant 0.000000e+00 : f32
    %8 = vector.broadcast %cst_6 : f32 to vector<32x384xf32>
    %9 = arith.maximumf %7, %8 : vector<32x384xf32>
    %10 = arith.truncf %9 : vector<32x384xf32> to vector<32x384xbf16>
    %c0_7 = arith.constant 0 : index
    %c0_8 = arith.constant 0 : index
    %11 = vector.load %arg5[%c0_7, %c0_8] : memref<32x32xbf16, #tpu.memory_space<vmem>>, vector<32x32xbf16>
    %cst_9 = arith.constant dense<0.000000e+00> : vector<32x384xf32>
    %12 = tpu.matmul %11, %10, %cst_9 {dimension_numbers = #tpu.dot_dimension_numbers<[1], [0], [0], [1], [0, 0, 1, 1], [], []>} : vector<32x32xbf16>, vector<32x384xbf16>, vector<32x384xf32> -> vector<32x384xf32>
    %c0_10 = arith.constant 0 : index
    %c0_11 = arith.constant 0 : index
    %13 = vector.load %arg6[%c0_10, %c0_11] : memref<32x1xf32, #tpu.memory_space<vmem>>, vector<32x1xf32>
    %14 = vector.broadcast %13 : vector<32x1xf32> to vector<32x384xf32>
    %15 = arith.addf %12, %14 : vector<32x384xf32>
    %cst_12 = arith.constant 0.000000e+00 : f32
    %16 = vector.broadcast %cst_12 : f32 to vector<32x384xf32>
    %17 = arith.maximumf %15, %16 : vector<32x384xf32>
    %18 = arith.truncf %17 : vector<32x384xf32> to vector<32x384xbf16>
    %c0_13 = arith.constant 0 : index
    %c0_14 = arith.constant 0 : index
    %19 = vector.load %arg7[%c0_13, %c0_14] : memref<40x32xbf16, #tpu.memory_space<vmem>>, vector<40x32xbf16>
    %cst_15 = arith.constant dense<0.000000e+00> : vector<40x384xf32>
    %20 = tpu.matmul %19, %18, %cst_15 {dimension_numbers = #tpu.dot_dimension_numbers<[1], [0], [0], [1], [0, 0, 1, 1], [], []>} : vector<40x32xbf16>, vector<32x384xbf16>, vector<40x384xf32> -> vector<40x384xf32>
    %c0_16 = arith.constant 0 : index
    %c0_17 = arith.constant 0 : index
    %21 = vector.load %arg8[%c0_16, %c0_17] : memref<40x1xf32, #tpu.memory_space<vmem>>, vector<40x1xf32>
    %22 = vector.broadcast %21 : vector<40x1xf32> to vector<40x384xf32>
    %23 = arith.addf %20, %22 : vector<40x384xf32>
    %c0_18 = arith.constant 0 : index
    %c0_19 = arith.constant 0 : index
    %c0_20 = arith.constant 0 : index
    %24 = vector.load %arg2[%c0_18, %c0_19, %c0_20] : memref<1x32x384xf32, #tpu.memory_space<vmem>>, vector<1x32x384xf32>
    %25 = vector.shape_cast %24 : vector<1x32x384xf32> to vector<32x384xf32>
    %26 = vector.extract_strided_slice %23 {offsets = [0, 0], sizes = [32, 384], strides = [1, 1]} : vector<40x384xf32> to vector<32x384xf32>
    %27 = arith.addf %25, %26 : vector<32x384xf32>
    %c0_21 = arith.constant 0 : index
    %c0_22 = arith.constant 0 : index
    %c0_23 = arith.constant 0 : index
    %28 = vector.load %arg10[%c0_21, %c0_22, %c0_23] : memref<1x32x384xf32, #tpu.memory_space<vmem>>, vector<1x32x384xf32>
    %29 = vector.shape_cast %28 : vector<1x32x384xf32> to vector<32x384xf32>
    %30 = vector.shape_cast %27 : vector<32x384xf32> to vector<1x32x384xf32>
    tpu.vector_store %arg10[%c0_21, %c0_22, %c0_23], %30 {strides = array<i32>} : memref<1x32x384xf32, #tpu.memory_space<vmem>>, vector<1x32x384xf32>,
    %31 = vector.extract_strided_slice %23 {offsets = [32, 0], sizes = [8, 384], strides = [1, 1]} : vector<40x384xf32> to vector<8x384xf32>
    %32 = tpu.transpose %31, [1, 0] : vector<8x384xf32> -> vector<384x8xf32>
    %c0_24 = arith.constant 0 : index
    %c0_25 = arith.constant 0 : index
    %c0_26 = arith.constant 0 : index
    %33 = vector.load %arg1[%c0_24, %c0_25, %c0_26] : memref<1x384x3xf32, #tpu.memory_space<vmem>>, vector<1x384x3xf32>
    %34 = vector.shape_cast %33 : vector<1x384x3xf32> to vector<384x3xf32>
    %35 = vector.extract_strided_slice %32 {offsets = [0, 0], sizes = [384, 3], strides = [1, 1]} : vector<384x8xf32> to vector<384x3xf32>
    %36 = arith.addf %34, %35 : vector<384x3xf32>
    %c0_27 = arith.constant 0 : index
    %c0_28 = arith.constant 0 : index
    %c0_29 = arith.constant 0 : index
    %37 = vector.load %arg9[%c0_27, %c0_28, %c0_29] : memref<1x384x3xf32, #tpu.memory_space<vmem>>, vector<1x384x3xf32>
    %38 = vector.shape_cast %37 : vector<1x384x3xf32> to vector<384x3xf32>
    %39 = vector.shape_cast %36 : vector<384x3xf32> to vector<1x384x3xf32>
    tpu.vector_store %arg9[%c0_27, %c0_28, %c0_29], %39 {strides = array<i32>} : memref<1x384x3xf32, #tpu.memory_space<vmem>>, vector<1x384x3xf32>,
    return
  }
  func.func @transform_0(%arg0: i32) -> (i32, i32, i32) {
    %c0_i32 = arith.constant 0 : i32
    %c0_i32_0 = arith.constant 0 : i32
    %c0_i32_1 = arith.constant 0 : i32
    return %arg0, %c0_i32, %c0_i32_0 : i32, i32, i32
  }
  func.func @transform_1(%arg0: i32) -> (i32, i32, i32) {
    %c0_i32 = arith.constant 0 : i32
    %c0_i32_0 = arith.constant 0 : i32
    %c0_i32_1 = arith.constant 0 : i32
    return %arg0, %c0_i32, %c0_i32_0 : i32, i32, i32
  }
  func.func @transform_2(%arg0: i32) -> (i32, i32) {
    %c0_i32 = arith.constant 0 : i32
    %c0_i32_0 = arith.constant 0 : i32
    %c0_i32_1 = arith.constant 0 : i32
    return %c0_i32, %c0_i32_0 : i32, i32
  }
  func.func @transform_3(%arg0: i32) -> (i32, i32) {
    %c0_i32 = arith.constant 0 : i32
    %c0_i32_0 = arith.constant 0 : i32
    %c0_i32_1 = arith.constant 0 : i32
    return %c0_i32, %c0_i32_0 : i32, i32
  }
  func.func @transform_4(%arg0: i32) -> (i32, i32) {
    %c0_i32 = arith.constant 0 : i32
    %c0_i32_0 = arith.constant 0 : i32
    %c0_i32_1 = arith.constant 0 : i32
    return %c0_i32, %c0_i32_0 : i32, i32
  }
  func.func @transform_5(%arg0: i32) -> (i32, i32) {
    %c0_i32 = arith.constant 0 : i32
    %c0_i32_0 = arith.constant 0 : i32
    %c0_i32_1 = arith.constant 0 : i32
    return %c0_i32, %c0_i32_0 : i32, i32
  }
  func.func @transform_6(%arg0: i32) -> (i32, i32) {
    %c0_i32 = arith.constant 0 : i32
    %c0_i32_0 = arith.constant 0 : i32
    %c0_i32_1 = arith.constant 0 : i32
    return %c0_i32, %c0_i32_0 : i32, i32
  }
  func.func @transform_7(%arg0: i32) -> (i32, i32) {
    %c0_i32 = arith.constant 0 : i32
    %c0_i32_0 = arith.constant 0 : i32
    %c0_i32_1 = arith.constant 0 : i32
    return %c0_i32, %c0_i32_0 : i32, i32
  }
  func.func @transform_8(%arg0: i32) -> (i32, i32, i32) {
    %c0_i32 = arith.constant 0 : i32
    %c0_i32_0 = arith.constant 0 : i32
    %c0_i32_1 = arith.constant 0 : i32
    return %arg0, %c0_i32, %c0_i32_0 : i32, i32, i32
  }
  func.func @transform_9(%arg0: i32) -> (i32, i32, i32) {
    %c0_i32 = arith.constant 0 : i32
    %c0_i32_0 = arith.constant 0 : i32
    %c0_i32_1 = arith.constant 0 : i32
    return %arg0, %c0_i32, %c0_i32_0 : i32, i32, i32
  }
}

</mosaic_0001>

<bundles_post_ra>
// kernel: tpu_custom_call.1
= control target key start
LH: loop header
LB: loop body
LE: loop exit
PB: predicated region body
PF: predicated region fallthrough
CT: control target
= control target key end

     0   :  { %15 = vsyncpa [#allocation3], 0  ;;  %s1755_s0 = inlined_call_operand.vmem [shape: f32[2,384,3], index: 0, kind: input, shape index: {}]   ;;  %s1756_s1 = inlined_call_operand.vmem [shape: f32[2,32,384], index: 1, kind: input, shape index: {}]   ;;  %s1757_s2 = inlined_call_operand.vmem [shape: bf16[32,32], index: 2, kind: input, shape index: {}]   ;;  %s1758_s3 = inlined_call_operand.vmem [shape: f32[32,1], index: 3, kind: input, shape index: {}]   ;;  %s1759_s4 = inlined_call_operand.vmem [shape: bf16[32,32], index: 4, kind: input, shape index: {}]   ;;  %s1760_s5 = inlined_call_operand.vmem [shape: f32[32,1], index: 5, kind: input, shape index: {}]   ;;  %s1761_s6 = inlined_call_operand.vmem [shape: bf16[40,32], index: 6, kind: input, shape index: {}]   ;;  %s1762_s7 = inlined_call_operand.vmem [shape: f32[40,1], index: 7, kind: input, shape index: {}]   ;;  %s1763_s8 = inlined_call_operand.vmem [shape: f32[2,384,3], index: 8, kind: output, shape index: {0}]   ;;  %s1764_s9 = inlined_call_operand.hbm [shape: f32[2,32,384], index: 9, kind: output, shape index: {1}]  }
   0x1   :  { %17 = vsyncpa [#allocation3 + $0x1], 0  ;;  %s1364_s30 = smov 0   ;;  %s1366_s10 = smov 0  }
   0x2   :  { %s1368_s11 = smov 0   ;;  %s1370_s12 = smov 0  }
   0x3 LB: > { %s1385_s13 = sadd.s32 4294967295, %s1309_s12   ;;  %s1136_s14 = sadd.s32 4294967294, %s1309_s12   ;;  %s1309_s12 = sphi %s1370_s12, %s1770_s12   ;;  %s1305_s11 = sphi %s1368_s11, %s1769_s11   ;;  %s1301_s10 = sphi %s1366_s10, %s1768_s10   ;;  %s1297_s30 = sphi %s1364_s30, %s1767_s30  }
   0x4   : > { %s1389_s15 = sadd.s32 1, %s1309_s12   ;;  %s234_s16 = sadd.s32 1, %s1305_s11 }
   0x5   : > { %s231_s17 = ssub.s32 %s1309_s12, %s1389_s15  ;;  %p244_p0 = scmp.ne.s32.totalorder %s1305_s11, %s1301_s10 }
   0x6   : > { %p232_p1 = scmp.eq.s32.totalorder %s231_s17, 0  ;;  %p245_p2 = scmp.eq.s32.totalorder %s1385_s13, 1 }
   0x7   : > { %p250_p3 = scmp.ne.s32.totalorder %s1301_s10, %s1297_s30  ;;  %p251_p4 = scmp.eq.s32.totalorder %s1136_s14, 1 }
   0x8   : > { %s1400_s18 = scalar_select %p232_p1, %s1305_s11, %s234_s16  }
   0x9   : > { %p1402_p5 = por %p245_p2, %p244_p0  ;;  %p1406_p6 = por %p251_p4, %p250_p3 }
   0xa   : > { %p1139_p7 = scmp.ge.s32.totalorder %s1309_s12, 1  ;;  %p303_p8 = scmp.lt.s32.totalorder %s1309_s12, 3 }
   0xc   : > { %p304_p9 = pnand %p1139_p7, %p303_p8 }
   0xd   : > { %p349_p10 = scmp.lt.s32.totalorder (!%p304_p9), %s1385_s13, 1  ;;  %s346_s21 = sand.u32 (!%p304_p9), 1, %s1301_s10  }
   0xe   : > { %307 = sbr.rel (%p304_p9) target bundleno = 835 (0x343), region = 52 }
   0xf   : > { %s1197_s22 = smul.u32 (!%p304_p9), 96, %s346_s21 }
  0x11   : > { %s1541_s23 = scalar_lea.vmem (!%p304_p9), [#allocation2], %s1197_s22 }
  0x13   : > { %v389_v0 = vld [vmem:[%s1758_s3 + $0x10] sm:$0xff]  ;;  %v387_v1 = vld [vmem:[%s1758_s3] sm:$0xff]  ;;  %v1311_v2 = vmov 0   ;;  %s1420_s25 = scalar_select %p349_p10, %s1385_s13, 1  ;;  %v390_v3 = vld [vmem:[%s1758_s3 + $0x18] sm:$0xff]  ;;  %vm421_vm0 = vcmask 261120  }
  0x14   : > { %1244 = vset.pattern.permute.xlu0 %v1311_v2  ;;  %1245 = vset.pattern.permute.xlu1 %v1311_v2  ;;  %v388_v4 = vld [vmem:[%s1758_s3 + $0x8] sm:$0xff]  ;;  %v1191_v22 = vld [vmem:[%s1757_s2] sm:$0xff]  ;;  %v629_v27 = vld [vmem:[%s1762_s7 + $0x10] sm:$0xff]  ;;  %vm964_vm1 = vcmask 23552  }
  0x15   : > { %403 = vperm.xlu0 %1244, %v389_v0   ;;  %393 = vperm.xlu1 %1245, %v387_v1   ;;  %s1199_s26 = smul.u32 96, %s1420_s25  ;;  %v507_v23 = vld [vmem:[%s1760_s5] sm:$0xff]  ;;  %v508_v25 = vld [vmem:[%s1760_s5 + $0x8] sm:$0xff]  ;;  %v509_v63 = vld [vmem:[%s1760_s5 + $0x10] sm:$0xff] }
  0x16   : > { %1246 = vset.pattern.permute.xlu2 %v1311_v2  ;;  %v628_v26 = vld [vmem:[%s1762_s7 + $0x8] sm:$0xff]  ;;  %v631_v29 = vld [vmem:[%s1762_s7 + $0x20] sm:$0xff]  ;;  %s1198_s24 = smul.u32 384, %s1420_s25 }
  0x17   : > { %s358_s29 = scalar_lea.vmem %s1756_s1, %s1199_s26  ;;  %v1192_v28 = vld [vmem:[%s1757_s2 + $0x8] sm:$0xff]  ;;  %v1193_v59 = vld [vmem:[%s1759_s4] sm:$0xff]  ;;  %523 = vperm.xlu2 %1246, %v509_v63   ;;  %s1200_s25 = smul.u32 96, %s1385_s13 }
  0x18   : > { %v1432_v5 = vld [vmem:[%s358_s29 + $0x30] sm:$0xff]  ;;  %v1434_v6 = vld [vmem:[%s358_s29 + $0x48] sm:$0xff]  ;;  %v1436_v7 = vld [vmem:[%s358_s29 + $0x40] sm:$0xff]  ;;  %s1570_s28 = scalar_lea.vmem %s1755_s0, %s1198_s24  ;;  %s1576_s16 = scalar_lea.vmem %s1763_s8, %s1198_s24 }
  0x19   : > { %v380_v8 = vpack.c.bf16 %v1434_v6, %v1432_v5  ;;  %v1440_v9 = vld [vmem:[%s358_s29 + $0x58] sm:$0xff]  ;;  %v1442_v10 = vld [vmem:[%s358_s29] sm:$0xff]  ;;  %v1448_v13 = vld [vmem:[%s358_s29 + $0x10] sm:$0xff]  ;;  %s1033_s24 = scalar_lea.hbm %s1764_s9, %s1200_s25  ;;  %s1034_s26 = sshll.u32 %s1541_s23, 4  ;;  %s1035_s26 = int_to_ptr.vmem [resolvable:$true] %s1034_s26 }
  0x1a   : > { %v1444_v11 = vld [vmem:[%s358_s29 + $0x18] sm:$0xff]  ;;  %v382_v12 = vpack.c.bf16 %v1440_v9, %v1436_v7  ;;  %v1450_v14 = vld [vmem:[%s358_s29 + $0x28] sm:$0xff]  ;;  %v1456_v17 = vld [vmem:[%s358_s29 + $0x50] sm:$0xff]  ;;  %s1036_s27 = sshll.u32 %s1033_s24, 4  ;;  %s1037_s27 = int_to_ptr.hbm [resolvable:$true] %s1036_s27 }
  0x1b   : > { %v1452_v15 = vld [vmem:[%s358_s29 + $0x38] sm:$0xff]  ;;  %434 = vmatpush.bf16.msra.mxu1 %v380_v8  ;;  %v377_v16 = vpack.c.bf16 %v1444_v11, %v1442_v10  ;;  %v379_v18 = vpack.c.bf16 %v1450_v14, %v1448_v13  ;;  %v1462_v20 = vld [vmem:[%s358_s29 + $0x8] sm:$0xff]  ;;  %v1464_v21 = vld [vmem:[%s358_s29 + $0x20] sm:$0xff]  ;;  %s1019_s29 = scalar_lea.sflag [#allocation3], %s346_s21  ;;  %s1261_s14 = sshra.s32 %s1037_s27, 4  ;;  %s1262_s14 = int_to_ptr.hbm [resolvable:$true] %s1261_s14 }
  0x1c   : > { %472 = vmatpush.bf16.msra.mxu2 %v382_v12  ;;  %v381_v19 = vpack.c.bf16 %v1456_v17, %v1452_v15  ;;  %v378_v24 = vpack.c.bf16 %v1464_v21, %v1462_v20  ;;  %s1263_s13 = scalar_lea.hbm %s1262_s14, 96  ;;  %p1268_p0 = scmp.lt.s32.totalorder %s1262_s14, %s1764_s9 }
  0x1d   : > { %408 = vperm.xlu0 %1244, %v390_v3   ;;  %398 = vperm.xlu1 %1245, %v388_v4   ;;  %v1194_v3 = vld [vmem:[%s1759_s4 + $0x8] sm:$0xff]  ;;  %v510_v4 = vld [vmem:[%s1760_s5 + $0x18] sm:$0xff]  ;;  %p1264_p11 = scmp.ne.s32.totalorder %s1262_s14, %s1263_s13 }
  0x1f   : > { %435 = vmatpush.bf16.msra.mxu1 %v377_v16  ;;  %528 = vperm.xlu2 %1246, %v510_v4   ;;  %v1196_v4 = vld [vmem:[%s1761_s6 + $0x8] sm:$0xff]  ;;  %p1265_p12 = pnand %p1264_p11, %p1402_p5 }
  0x20   : > { %473 = vmatpush.bf16.msra.mxu2 %v379_v18 }
  0x21   : > { %p1266_p13 = pneg %p1265_p12 }
  0x22   : > { %1151 = vmatmul.msk.bf16.vlgmr.msra.gmra.mxu1 %vm421_vm0, %v1191_v22 }
  0x23   : > { %453 = vmatpush.bf16.msrb.mxu1 %v381_v19  ;;  %1155 = vmatmul.msk.bf16.vlgmr.msra.gmra.mxu2 %vm421_vm0, %v1191_v22 }
  0x25   : > { %513 = vperm.xlu0 %1244, %v507_v23   ;;  %518 = vperm.xlu1 %1245, %v508_v25  }
  0x27   : > { %454 = vmatpush.bf16.msrb.mxu1 %v378_v24  ;;  %v627_v24 = vld [vmem:[%s1762_s7] sm:$0xff] }
  0x28   : > { %634 = vperm.xlu2 %1246, %v627_v24  }
  0x2d   : > { %639 = vperm.xlu0 %1244, %v628_v26   ;;  %644 = vperm.xlu1 %1245, %v629_v27  }
  0x32   : > { %1152 = vmatmul.msk.bf16.gmra.mxu1 %vm421_vm0, %v1192_v28 }
  0x33   : > { %1156 = vmatmul.msk.bf16.gmra.mxu2 %vm421_vm0, %v1192_v28 }
  0x35   : > { %654 = vperm.xlu0 %1244, %v631_v29   ;;  %v630_v29 = vld [vmem:[%s1762_s7 + $0x18] sm:$0xff] }
  0x36   : > { %649 = vperm.xlu2 %1246, %v630_v29  }
  0x42   : > { %1153 = vmatmul.msk.bf16.vlgmr.msrb.gmra.mxu1 %vm421_vm0, %v1191_v22 }
  0x52   : > { %1154 = vmatmul.msk.bf16.gmra.mxu1 %vm421_vm0, %v1192_v28 }
  0x87   : > { %v394_v33 = vpop.permute.xlu1 %393  ;;  %v404_v34 = vpop.permute.xlu0 %403 }
  0x8f   : > { %v399_v37 = vpop.permute.xlu1 %398  ;;  %v409_v40 = vpop.permute.xlu0 %408 }
  0x9f   : > { %v437_v30 = vpop.f32.mrf.mxu1 }
  0xa0   : > { %v438_v44 = vadd.f32 %v437_v30, %v394_v33 }
  0xa2   : > { %v485_v50 = vmax.f32 %v438_v44, 0.0 }
  0xa6   : > { %v475_v31 = vpop.f32.mrf.mxu2 }
  0xa7   : > { %v439_v32 = vpop.f32.mrf.mxu1  ;;  %v476_v52 = vadd.f32 %v475_v31, %v394_v33 }
  0xa8   : > { %v440_v42 = vadd.f32 %v439_v32, %v399_v37 }
  0xa9   : > { %v487_v60 = vmax.f32 %v476_v52, 0.0 }
  0xaa   : > { %v488_v48 = vmax.f32 %v440_v42, 0.0 }
  0xac   : > { %v497_v57 = vpack.c.bf16 %v488_v48, %v485_v50 }
  0xae   : > { %v477_v35 = vpop.f32.mrf.mxu2 }
  0xaf   : > { %v442_v36 = vpop.f32.mrf.mxu1  ;;  %v478_v53 = vadd.f32 %v477_v35, %v399_v37 }
  0xb0   : > { %v443_v38 = vadd.f32 %v442_v36, %v404_v34 }
  0xb1   : > { %v490_v61 = vmax.f32 %v478_v53, 0.0 }
  0xb2   : > { %v491_v45 = vmax.f32 %v443_v38, 0.0 }
  0xb3   : > { %v499_v0 = vpack.c.bf16 %v490_v61, %v487_v60 }
  0xb6   : > { %v480_v39 = vpop.f32.mrf.mxu2 }
  0xb7   : > { %v444_v41 = vpop.f32.mrf.mxu1  ;;  %v481_v47 = vadd.f32 %v480_v39, %v404_v34  ;;  %v519_v39 = vpop.permute.xlu1 %518 }
  0xb8   : > { %v445_v43 = vadd.f32 %v444_v41, %v409_v40 }
  0xb9   : > { %v493_v54 = vmax.f32 %v481_v47, 0.0 }
  0xba   : > { %v494_v46 = vmax.f32 %v445_v43, 0.0 }
  0xbc   : > { %v500_v49 = vpack.c.bf16 %v494_v46, %v491_v45  ;;  %v514_v46 = vpop.permute.xlu0 %513 }
  0xbe   : > { %v482_v51 = vpop.f32.mrf.mxu2  ;;  %553 = vmatpush.bf16.msra.mxu3 %v500_v49 }
  0xbf   : > { %v483_v55 = vadd.f32 %v482_v51, %v409_v40  ;;  %v456_v56 = vpop.f32.mrf.mxu1 }
  0xc0   : > { %v457_v19 = vadd.f32 %v456_v56, %v394_v33 }
  0xc1   : > { %v496_v58 = vmax.f32 %v483_v55, 0.0 }
  0xc2   : > { %554 = vmatpush.bf16.msra.mxu3 %v497_v57  ;;  %v486_v27 = vmax.f32 %v457_v19, 0.0 }
  0xc3   : > { %v502_v62 = vpack.c.bf16 %v496_v58, %v493_v54 }
  0xc5   : > { %591 = vmatpush.bf16.msra.mxu1 %v502_v62  ;;  %1165 = vmatmul.msk.bf16.vlgmr.msra.gmra.mxu3 %vm421_vm0, %v1193_v59 }
  0xc7   : > { %v458_v1 = vpop.f32.mrf.mxu1 }
  0xc8   : > { %v459_v16 = vadd.f32 %v458_v1, %v399_v37 }
  0xc9   : > { %592 = vmatpush.bf16.msra.mxu1 %v499_v0  ;;  %v1195_v0 = vld [vmem:[%s1761_s6] sm:$0xff] }
  0xca   : > { %v489_v25 = vmax.f32 %v459_v16, 0.0 }
  0xcc   : > { %1169 = vmatmul.msk.bf16.vlgmr.msra.gmra.mxu1 %vm421_vm0, %v1193_v59  ;;  %v498_v28 = vpack.c.bf16 %v489_v25, %v486_v27 }
  0xcf   : > { %v461_v2 = vpop.f32.mrf.mxu1 }
  0xd0   : > { %v462_v8 = vadd.f32 %v461_v2, %v404_v34  ;;  %v524_v34 = vpop.permute.xlu2 %523 }
  0xd2   : > { %v492_v22 = vmax.f32 %v462_v8, 0.0 }
  0xd5   : > { %1166 = vmatmul.msk.bf16.gmra.mxu3 %vm421_vm0, %v1194_v3 }
  0xd7   : > { %v463_v12 = vpop.f32.mrf.mxu1 }
  0xd8   : > { %v464_v18 = vadd.f32 %v463_v12, %v409_v40  ;;  %v529_v40 = vpop.permute.xlu2 %528 }
  0xda   : > { %v495_v23 = vmax.f32 %v464_v18, 0.0 }
  0xdc   : > { %1170 = vmatmul.msk.bf16.gmra.mxu1 %vm421_vm0, %v1194_v3  ;;  %v501_v26 = vpack.c.bf16 %v495_v23, %v492_v22 }
  0xde   : > { %572 = vmatpush.bf16.msra.mxu0 %v501_v26  ;;  %v626_v26 = vld [vmem:[%s1761_s6 + $0x10] sm:$0xf] }
  0xdf   : > { %v666_v27 = vunpack.c.l.b16 %v626_v26 }
  0xe0   : > { %v635_v29 = vpop.permute.xlu2 %634 }
  0xe2   : > { %573 = vmatpush.bf16.msra.mxu0 %v498_v28  ;;  %v669_v28 = vpack.c.b16 %v666_v27, %v666_v27  ;;  %v902_v27 = vld [vmem:[%s1570_s28 + $0x110] sm:$0xff] }
  0xe5   : > { %1167 = vmatmul.msk.bf16.vlgmr.msra.gmra.mxu0 %vm421_vm0, %v1193_v59 }
  0xf5   : > { %1168 = vmatmul.msk.bf16.gmra.mxu0 %vm421_vm0, %v1194_v3 }
 0x148   : > { %v556_v30 = vpop.f32.mrf.mxu3 }
 0x149   : > { %v594_v31 = vpop.f32.mrf.mxu1  ;;  %v557_v51 = vadd.f32 %v556_v30, %v514_v46 }
 0x14a   : > { %v595_v53 = vadd.f32 %v594_v31, %v514_v46 }
 0x14b   : > { %v604_v59 = vmax.f32 %v557_v51, 0.0 }
 0x14c   : > { %v606_v60 = vmax.f32 %v595_v53, 0.0 }
 0x150   : > { %v558_v32 = vpop.f32.mrf.mxu3 }
 0x151   : > { %v596_v33 = vpop.f32.mrf.mxu1  ;;  %v559_v42 = vadd.f32 %v558_v32, %v519_v39 }
 0x152   : > { %v597_v47 = vadd.f32 %v596_v33, %v519_v39 }
 0x153   : > { %v607_v55 = vmax.f32 %v559_v42, 0.0 }
 0x154   : > { %v609_v57 = vmax.f32 %v597_v47, 0.0  ;;  %v650_v47 = vpop.permute.xlu2 %649 }
 0x155   : > { %v616_v61 = vpack.c.bf16 %v607_v55, %v604_v59 }
 0x156   : > { %v618_v63 = vpack.c.bf16 %v609_v57, %v606_v60 }
 0x158   : > { %v561_v35 = vpop.f32.mrf.mxu3 }
 0x159   : > { %v599_v36 = vpop.f32.mrf.mxu1  ;;  %v562_v37 = vadd.f32 %v561_v35, %v524_v34  ;;  %v640_v35 = vpop.permute.xlu0 %639 }
 0x15a   : > { %v600_v38 = vadd.f32 %v599_v36, %v524_v34 }
 0x15b   : > { %v610_v43 = vmax.f32 %v562_v37, 0.0 }
 0x15c   : > { %v612_v48 = vmax.f32 %v600_v38, 0.0 }
 0x160   : > { %v563_v41 = vpop.f32.mrf.mxu3 }
 0x161   : > { %v564_v44 = vadd.f32 %v563_v41, %v529_v40  ;;  %v601_v45 = vpop.f32.mrf.mxu1  ;;  %v645_v41 = vpop.permute.xlu1 %644 }
 0x162   : > { %v602_v49 = vadd.f32 %v601_v45, %v529_v40  ;;  %v575_v50 = vpop.f32.mrf.mxu0  ;;  %v655_v53 = vpop.permute.xlu0 %654 }
 0x163   : > { %v613_v52 = vmax.f32 %v564_v44, 0.0  ;;  %v576_v16 = vadd.f32 %v575_v50, %v514_v46 }
 0x164   : > { %v615_v54 = vmax.f32 %v602_v49, 0.0 }
 0x165   : > { %v619_v56 = vpack.c.bf16 %v613_v52, %v610_v43  ;;  %v605_v24 = vmax.f32 %v576_v16, 0.0 }
 0x166   : > { %v621_v58 = vpack.c.bf16 %v615_v54, %v612_v48 }
 0x167   : > { %685 = vmatpush.bf16.msrb.mxu2 %v619_v56 }
 0x168   : > { %731 = vmatpush.bf16.msrb.mxu0 %v621_v58 }
 0x16a   : > { %v577_v62 = vpop.f32.mrf.mxu0 }
 0x16b   : > { %686 = vmatpush.bf16.msrb.mxu2 %v616_v61  ;;  %v578_v8 = vadd.f32 %v577_v62, %v519_v39 }
 0x16c   : > { %732 = vmatpush.bf16.msrb.mxu0 %v618_v63 }
 0x16d   : > { %v608_v22 = vmax.f32 %v578_v8, 0.0 }
 0x16e   : > { %1179 = vmatmul.msk.bf16.vlgmr.msrb.gmra.mxu2 %vm421_vm0, %v1195_v0 }
 0x16f   : > { %1185 = vmatmul.msk.bf16.vlgmr.msrb.gmra.mxu0 %vm421_vm0, %v1195_v0  ;;  %v617_v25 = vpack.c.bf16 %v608_v22, %v605_v24  ;;  %v869_v24 = vld [vmem:[%s1570_s28 + $0x8] sm:$0xff] }
 0x172   : > { %v580_v1 = vpop.f32.mrf.mxu0 }
 0x173   : > { %v581_v2 = vadd.f32 %v580_v1, %v524_v34 }
 0x175   : > { %v611_v18 = vmax.f32 %v581_v2, 0.0 }
 0x17a   : > { %v582_v3 = vpop.f32.mrf.mxu0 }
 0x17b   : > { %v583_v12 = vadd.f32 %v582_v3, %v529_v40 }
 0x17d   : > { %v614_v19 = vmax.f32 %v583_v12, 0.0  ;;  %v868_v12 = vld [vmem:[%s1570_s28] sm:$0xff] }
 0x17e   : > { %1180 = vmatmul.msk.bf16.gmra.mxu2 %vm421_vm0, %v1196_v4 }
 0x17f   : > { %1186 = vmatmul.msk.bf16.gmra.mxu0 %vm421_vm0, %v1196_v4  ;;  %v620_v23 = vpack.c.bf16 %v614_v19, %v611_v18  ;;  %v901_v19 = vld [vmem:[%s1570_s28 + $0x108] sm:$0xff] }
 0x181   : > { %708 = vmatpush.bf16.msrb.mxu3 %v620_v23 }
 0x185   : > { %709 = vmatpush.bf16.msrb.mxu3 %v617_v25 }
 0x188   : > { %1182 = vmatmul.msk.bf16.vlgmr.msrb.gmra.mxu3 %vm421_vm0, %v1195_v0 }
 0x18e   : > { %1181 = vmatmul.msk.bf16.gmra.mxu2 %vm421_vm0, %v669_v28 }
 0x18f   : > { %1187 = vmatmul.msk.bf16.gmra.mxu0 %vm421_vm0, %v669_v28 }
 0x198   : > { %1183 = vmatmul.msk.bf16.gmra.mxu3 %vm421_vm0, %v1196_v4 }
 0x1a8   : > { %1184 = vmatmul.msk.bf16.gmra.mxu3 %vm421_vm0, %v669_v28 }
 0x1ec   : > { %v734_v30 = vpop.f32.mrf.mxu0 }
 0x1ed   : > { %v735_v31 = vadd.f32 %v734_v30, %v635_v29 }
 0x1ef   : > { %v750_v32 = vadd.f32 %v735_v31, %v1448_v13 }
 0x1f1   : > { %762 = vst [vmem:[%s1541_s23 + $0x10] sm:$0xff] %v750_v32  ;;  %v688_v33 = vpop.f32.mrf.mxu2 }
 0x1f2   : > { %v689_v34 = vadd.f32 %v688_v33, %v635_v29 }
 0x1f4   : > { %v748_v36 = vadd.f32 %v689_v34, %v1442_v10  ;;  %v736_v37 = vpop.f32.mrf.mxu0 }
 0x1f5   : > { %v737_v38 = vadd.f32 %v736_v37, %v640_v35 }
 0x1f6   : > { %760 = vst [vmem:[%s1541_s23] sm:$0xff] %v748_v36 }
 0x1f7   : > { %v753_v39 = vadd.f32 %v737_v38, %v1450_v14 }
 0x1f9   : > { %765 = vst [vmem:[%s1541_s23 + $0x28] sm:$0xff] %v753_v39  ;;  %v690_v13 = vpop.f32.mrf.mxu2 }
 0x1fa   : > { %v691_v40 = vadd.f32 %v690_v13, %v640_v35 }
 0x1fc   : > { %v751_v42 = vadd.f32 %v691_v40, %v1444_v11  ;;  %v739_v43 = vpop.f32.mrf.mxu0 }
 0x1fd   : > { %v740_v44 = vadd.f32 %v739_v43, %v645_v41 }
 0x1fe   : > { %763 = vst [vmem:[%s1541_s23 + $0x18] sm:$0xff] %v751_v42 }
 0x1ff   : > { %v756_v45 = vadd.f32 %v740_v44, %v1436_v7 }
 0x201   : > { %768 = vst [vmem:[%s1541_s23 + $0x40] sm:$0xff] %v756_v45  ;;  %v693_v10 = vpop.f32.mrf.mxu2 }
 0x202   : > { %v694_v46 = vadd.f32 %v693_v10, %v645_v41 }
 0x204   : > { %v754_v14 = vadd.f32 %v694_v46, %v1432_v5  ;;  %v741_v48 = vpop.f32.mrf.mxu0 }
 0x205   : > { %v742_v49 = vadd.f32 %v741_v48, %v650_v47 }
 0x206   : > { %766 = vst [vmem:[%s1541_s23 + $0x30] sm:$0xff] %v754_v14 }
 0x207   : > { %v759_v50 = vadd.f32 %v742_v49, %v1440_v9 }
 0x209   : > { %771 = vst [vmem:[%s1541_s23 + $0x58] sm:$0xff] %v759_v50  ;;  %v695_v11 = vpop.f32.mrf.mxu2 }
 0x20a   : > { %v696_v51 = vadd.f32 %v695_v11, %v650_v47 }
 0x20b   : > { %v711_v52 = vpop.f32.mrf.mxu3 }
 0x20c   : > { %v757_v7 = vadd.f32 %v696_v51, %v1434_v6  ;;  %v712_v54 = vadd.f32 %v711_v52, %v635_v29  ;;  %v744_v55 = vpop.f32.mrf.mxu0 }
 0x20d   : > { %v745_v56 = vadd.f32 %v744_v55, %v655_v53 }
 0x20e   : > { %769 = vst [vmem:[%s1541_s23 + $0x48] sm:$0xff] %v757_v7  ;;  %v749_v5 = vadd.f32 %v712_v54, %v1462_v20 }
 0x20f   : > { %836 = vxpose.xlu0.b32.start.end [1/1] (short) %v745_v56, 128 }
 0x210   : > { %761 = vst [vmem:[%s1541_s23 + $0x8] sm:$0xff] %v749_v5 }
 0x211   : > { %v698_v57 = vpop.f32.mrf.mxu2 }
 0x212   : > { %v699_v9 = vadd.f32 %v698_v57, %v655_v53 }
 0x213   : > { %v713_v58 = vpop.f32.mrf.mxu3 }
 0x214   : > { %v714_v59 = vadd.f32 %v713_v58, %v640_v35  ;;  %772 = vxpose.xlu1.b32.start.end [1/1] (short) %v699_v9, 128  ;;  %v746_v60 = vpop.f32.mrf.mxu0 }
 0x216   : > { %v752_v61 = vadd.f32 %v714_v59, %v1464_v21 }
 0x218   : > { %764 = vst [vmem:[%s1541_s23 + $0x20] sm:$0xff] %v752_v61 }
 0x219   : > { %v700_v6 = vpop.f32.mrf.mxu2 }
 0x21b   : > { %v716_v62 = vpop.f32.mrf.mxu3 }
 0x21c   : > { %v717_v63 = vadd.f32 %v716_v62, %v645_v41 }
 0x21e   : > { %v755_v0 = vadd.f32 %v717_v63, %v1452_v15  ;;  %v900_v15 = vld [vmem:[%s1570_s28 + $0x100] sm:$0xff] }
 0x220   : > { %767 = vst [vmem:[%s1541_s23 + $0x38] sm:$0xff] %v755_v0 }
 0x223   : > { %v718_v20 = vpop.f32.mrf.mxu3 }
 0x224   : > { %v719_v1 = vadd.f32 %v718_v20, %v650_v47 }
 0x226   : > { %v758_v2 = vadd.f32 %v719_v1, %v1456_v17 }
 0x228   : > { %770 = vst [vmem:[%s1541_s23 + $0x50] sm:$0xff] %v758_v2  ;;  %s1267_s23 = scalar_lea.hbm %s1764_s9, 192 }
 0x229   : > { %p1269_p1 = scmp.lt.s32.totalorder %s1267_s23, %s1263_s13 }
 0x22b   : > { %v721_v3 = vpop.f32.mrf.mxu3  ;;  %p1270_p2 = por %p1269_p1, %p1268_p0 }
 0x22c   : > { %v722_v4 = vadd.f32 %v721_v3, %v655_v53 }
 0x22d   : > { %p1271_p3 = pnand %p1270_p2, %p1266_p13 }
 0x22e   : > { %804 = vxpose.xlu2.b32.start.end [1/1] (short) %v722_v4, 128 }
 0x233   : > { %v723_v8 = vpop.f32.mrf.mxu3 }
 0x2b3   : > { %v852_v21 = vpop.trf.xlu0 }
 0x2b4   : > { %v948_v17 = vadd.f32 %v900_v15, %v852_v21 }
 0x2b6   : > { %997 = vst.msk [vmem:[%s1576_s16 + $0x100] sm:$0xff] %vm964_vm1, %v948_v17 }
 0x2b8   : > { %v788_v16 = vpop.trf.xlu1 }
 0x2b9   : > { %v916_v18 = vadd.f32 %v868_v12, %v788_v16 }
 0x2bb   : > { %965 = vst.msk [vmem:[%s1576_s16] sm:$0xff] %vm964_vm1, %v916_v18  ;;  %v853_v22 = vpop.trf.xlu0 }
 0x2bc   : > { %v949_v23 = vadd.f32 %v901_v19, %v853_v22 }
 0x2be   : > { %998 = vst.msk [vmem:[%s1576_s16 + $0x108] sm:$0xff] %vm964_vm1, %v949_v23 }
 0x2c0   : > { %v789_v25 = vpop.trf.xlu1 }
 0x2c1   : > { %v917_v26 = vadd.f32 %v869_v24, %v789_v25 }
 0x2c3   : > { %966 = vst.msk [vmem:[%s1576_s16 + $0x8] sm:$0xff] %vm964_vm1, %v917_v26  ;;  %v854_v28 = vpop.trf.xlu0 }
 0x2c4   : > { %v950_v29 = vadd.f32 %v902_v27, %v854_v28 }
 0x2c5   : > { %1274 = shalt.err (!%p1271_p3)
}
 0x2c6   : > { %s1312_s21 = smov 384   ;;  %s1313_s25 = smov 24   ;;  %v884_v30 = vld [vmem:[%s1570_s28 + $0x80] sm:$0xff]  ;;  %999 = vst.msk [vmem:[%s1576_s16 + $0x110] sm:$0xff] %vm964_vm1, %v950_v29  ;;  %v870_v31 = vld [vmem:[%s1570_s28 + $0x10] sm:$0xff]  ;;  %v903_v36 = vld [vmem:[%s1570_s28 + $0x118] sm:$0xff] }
 0x2c7   : > { %1201 = dma.vmem_to_hbm [thread:$0]  (%p1402_p5), %s1035_s26, 1536, %s1037_s27, %s1019_s29, %s1312_s21, %s1312_s21, %s1313_s25   ;;  %v820_v32 = vpop.trf.xlu2 }
 0x2c8   : > { %v932_v33 = vadd.f32 %v884_v30, %v820_v32  ;;  %v790_v34 = vpop.trf.xlu1  ;;  %v885_v39 = vld [vmem:[%s1570_s28 + $0x88] sm:$0xff]  ;;  %v871_v13 = vld [vmem:[%s1570_s28 + $0x18] sm:$0xff]  ;;  %v904_v44 = vld [vmem:[%s1570_s28 + $0x120] sm:$0xff] }
 0x2c9   : > { %v918_v35 = vadd.f32 %v870_v31, %v790_v34  ;;  %v886_v46 = vld [vmem:[%s1570_s28 + $0x90] sm:$0xff]  ;;  %v872_v47 = vld [vmem:[%s1570_s28 + $0x20] sm:$0xff]  ;;  %v905_v11 = vld [vmem:[%s1570_s28 + $0x128] sm:$0xff] }
 0x2ca   : > { %981 = vst.msk [vmem:[%s1576_s16 + $0x80] sm:$0xff] %vm964_vm1, %v932_v33  ;;  %v887_v53 = vld [vmem:[%s1570_s28 + $0x98] sm:$0xff]  ;;  %v873_v7 = vld [vmem:[%s1570_s28 + $0x28] sm:$0xff]  ;;  %v906_v57 = vld [vmem:[%s1570_s28 + $0x130] sm:$0xff] }
 0x2cb   : > { %967 = vst.msk [vmem:[%s1576_s16 + $0x10] sm:$0xff] %vm964_vm1, %v918_v35  ;;  %v855_v37 = vpop.trf.xlu0  ;;  %v888_v59 = vld [vmem:[%s1570_s28 + $0xa0] sm:$0xff]  ;;  %v874_v60 = vld [vmem:[%s1570_s28 + $0x30] sm:$0xff]  ;;  %v907_v0 = vld [vmem:[%s1570_s28 + $0x138] sm:$0xff] }
 0x2cc   : > { %v951_v38 = vadd.f32 %v903_v36, %v855_v37  ;;  %v889_v2 = vld [vmem:[%s1570_s28 + $0xa8] sm:$0xff]  ;;  %v875_v3 = vld [vmem:[%s1570_s28 + $0x38] sm:$0xff]  ;;  %v908_v17 = vld [vmem:[%s1570_s28 + $0x140] sm:$0xff] }
 0x2cd   : > { %v890_v18 = vld [vmem:[%s1570_s28 + $0xb0] sm:$0xff]  ;;  %v876_v19 = vld [vmem:[%s1570_s28 + $0x40] sm:$0xff]  ;;  %v909_v26 = vld [vmem:[%s1570_s28 + $0x148] sm:$0xff] }
 0x2ce   : > { %1000 = vst.msk [vmem:[%s1576_s16 + $0x118] sm:$0xff] %vm964_vm1, %v951_v38  ;;  %v891_v29 = vld [vmem:[%s1570_s28 + $0xb8] sm:$0xff]  ;;  %v877_v30 = vld [vmem:[%s1570_s28 + $0x48] sm:$0xff]  ;;  %v910_v35 = vld [vmem:[%s1570_s28 + $0x150] sm:$0xff] }
 0x2cf   : > { %v821_v40 = vpop.trf.xlu2  ;;  %v892_v38 = vld [vmem:[%s1570_s28 + $0xc0] sm:$0xff] }
 0x2d0   : > { %v933_v41 = vadd.f32 %v885_v39, %v821_v40  ;;  %v791_v42 = vpop.trf.xlu1  ;;  %v878_v39 = vld [vmem:[%s1570_s28 + $0x50] sm:$0xff] }
 0x2d1   : > { %v919_v43 = vadd.f32 %v871_v13, %v791_v42 }
 0x2d2   : > { %982 = vst.msk [vmem:[%s1576_s16 + $0x88] sm:$0xff] %vm964_vm1, %v933_v41 }
 0x2d3   : > { %968 = vst.msk [vmem:[%s1576_s16 + $0x18] sm:$0xff] %vm964_vm1, %v919_v43  ;;  %v856_v45 = vpop.trf.xlu0  ;;  %v911_v43 = vld [vmem:[%s1570_s28 + $0x158] sm:$0xff] }
 0x2d4   : > { %v952_v10 = vadd.f32 %v904_v44, %v856_v45 }
 0x2d6   : > { %1001 = vst.msk [vmem:[%s1576_s16 + $0x120] sm:$0xff] %vm964_vm1, %v952_v10  ;;  %v893_v10 = vld [vmem:[%s1570_s28 + $0xc8] sm:$0xff] }
 0x2d7   : > { %v822_v14 = vpop.trf.xlu2 }
 0x2d8   : > { %v934_v48 = vadd.f32 %v886_v46, %v822_v14  ;;  %v792_v49 = vpop.trf.xlu1  ;;  %v879_v46 = vld [vmem:[%s1570_s28 + $0x58] sm:$0xff] }
 0x2d9   : > { %v920_v50 = vadd.f32 %v872_v47, %v792_v49 }
 0x2da   : > { %983 = vst.msk [vmem:[%s1576_s16 + $0x90] sm:$0xff] %vm964_vm1, %v934_v48 }
 0x2db   : > { %969 = vst.msk [vmem:[%s1576_s16 + $0x20] sm:$0xff] %vm964_vm1, %v920_v50  ;;  %v857_v51 = vpop.trf.xlu0  ;;  %v912_v50 = vld [vmem:[%s1570_s28 + $0x160] sm:$0xff] }
 0x2dc   : > { %v953_v52 = vadd.f32 %v905_v11, %v857_v51 }
 0x2de   : > { %1002 = vst.msk [vmem:[%s1576_s16 + $0x128] sm:$0xff] %vm964_vm1, %v953_v52  ;;  %v894_v52 = vld [vmem:[%s1570_s28 + $0xd0] sm:$0xff] }
 0x2df   : > { %v823_v54 = vpop.trf.xlu2 }
 0x2e0   : > { %v935_v55 = vadd.f32 %v887_v53, %v823_v54  ;;  %v793_v56 = vpop.trf.xlu1  ;;  %v880_v53 = vld [vmem:[%s1570_s28 + $0x60] sm:$0xff] }
 0x2e1   : > { %v921_v5 = vadd.f32 %v873_v7, %v793_v56 }
 0x2e2   : > { %984 = vst.msk [vmem:[%s1576_s16 + $0x98] sm:$0xff] %vm964_vm1, %v935_v55 }
 0x2e3   : > { %970 = vst.msk [vmem:[%s1576_s16 + $0x28] sm:$0xff] %vm964_vm1, %v921_v5  ;;  %v858_v9 = vpop.trf.xlu0  ;;  %v913_v5 = vld [vmem:[%s1570_s28 + $0x168] sm:$0xff] }
 0x2e4   : > { %v954_v58 = vadd.f32 %v906_v57, %v858_v9 }
 0x2e6   : > { %1003 = vst.msk [vmem:[%s1576_s16 + $0x130] sm:$0xff] %vm964_vm1, %v954_v58  ;;  %v895_v58 = vld [vmem:[%s1570_s28 + $0xd8] sm:$0xff] }
 0x2e7   : > { %v824_v61 = vpop.trf.xlu2 }
 0x2e8   : > { %v936_v6 = vadd.f32 %v888_v59, %v824_v61  ;;  %v794_v62 = vpop.trf.xlu1  ;;  %v881_v59 = vld [vmem:[%s1570_s28 + $0x68] sm:$0xff] }
 0x2e9   : > { %v922_v63 = vadd.f32 %v874_v60, %v794_v62 }
 0x2ea   : > { %985 = vst.msk [vmem:[%s1576_s16 + $0xa0] sm:$0xff] %vm964_vm1, %v936_v6 }
 0x2eb   : > { %971 = vst.msk [vmem:[%s1576_s16 + $0x30] sm:$0xff] %vm964_vm1, %v922_v63  ;;  %v859_v20 = vpop.trf.xlu0  ;;  %v914_v63 = vld [vmem:[%s1570_s28 + $0x170] sm:$0xff] }
 0x2ec   : > { %v955_v1 = vadd.f32 %v907_v0, %v859_v20 }
 0x2ee   : > { %1004 = vst.msk [vmem:[%s1576_s16 + $0x138] sm:$0xff] %vm964_vm1, %v955_v1  ;;  %v896_v1 = vld [vmem:[%s1570_s28 + $0xe0] sm:$0xff] }
 0x2ef   : > { %v825_v4 = vpop.trf.xlu2 }
 0x2f0   : > { %v937_v8 = vadd.f32 %v889_v2, %v825_v4  ;;  %v795_v15 = vpop.trf.xlu1  ;;  %v882_v2 = vld [vmem:[%s1570_s28 + $0x70] sm:$0xff] }
 0x2f1   : > { %v923_v21 = vadd.f32 %v875_v3, %v795_v15 }
 0x2f2   : > { %986 = vst.msk [vmem:[%s1576_s16 + $0xa8] sm:$0xff] %vm964_vm1, %v937_v8 }
 0x2f3   : > { %972 = vst.msk [vmem:[%s1576_s16 + $0x38] sm:$0xff] %vm964_vm1, %v923_v21  ;;  %v860_v12 = vpop.trf.xlu0  ;;  %v915_v21 = vld [vmem:[%s1570_s28 + $0x178] sm:$0xff] }
 0x2f4   : > { %v956_v16 = vadd.f32 %v908_v17, %v860_v12 }
 0x2f6   : > { %1005 = vst.msk [vmem:[%s1576_s16 + $0x140] sm:$0xff] %vm964_vm1, %v956_v16  ;;  %v897_v16 = vld [vmem:[%s1570_s28 + $0xe8] sm:$0xff] }
 0x2f7   : > { %v826_v22 = vpop.trf.xlu2 }
 0x2f8   : > { %v938_v23 = vadd.f32 %v890_v18, %v826_v22  ;;  %v796_v24 = vpop.trf.xlu1  ;;  %v883_v18 = vld [vmem:[%s1570_s28 + $0x78] sm:$0xff] }
 0x2f9   : > { %v924_v25 = vadd.f32 %v876_v19, %v796_v24 }
 0x2fa   : > { %987 = vst.msk [vmem:[%s1576_s16 + $0xb0] sm:$0xff] %vm964_vm1, %v938_v23 }
 0x2fb   : > { %973 = vst.msk [vmem:[%s1576_s16 + $0x40] sm:$0xff] %vm964_vm1, %v924_v25  ;;  %v861_v27 = vpop.trf.xlu0  ;;  %v898_v25 = vld [vmem:[%s1570_s28 + $0xf0] sm:$0xff] }
 0x2fc   : > { %v957_v28 = vadd.f32 %v909_v26, %v861_v27 }
 0x2fe   : > { %1006 = vst.msk [vmem:[%s1576_s16 + $0x148] sm:$0xff] %vm964_vm1, %v957_v28  ;;  %v899_v28 = vld [vmem:[%s1570_s28 + $0xf8] sm:$0xff] }
 0x2ff   : > { %v827_v31 = vpop.trf.xlu2 }
 0x300   : > { %v939_v32 = vadd.f32 %v891_v29, %v827_v31  ;;  %v797_v33 = vpop.trf.xlu1 }
 0x301   : > { %v925_v34 = vadd.f32 %v877_v30, %v797_v33 }
 0x302   : > { %988 = vst.msk [vmem:[%s1576_s16 + $0xb8] sm:$0xff] %vm964_vm1, %v939_v32 }
 0x303   : > { %974 = vst.msk [vmem:[%s1576_s16 + $0x48] sm:$0xff] %vm964_vm1, %v925_v34  ;;  %v862_v36 = vpop.trf.xlu0 }
 0x304   : > { %v958_v37 = vadd.f32 %v910_v35, %v862_v36 }
 0x306   : > { %1007 = vst.msk [vmem:[%s1576_s16 + $0x150] sm:$0xff] %vm964_vm1, %v958_v37 }
 0x307   : > { %v828_v13 = vpop.trf.xlu2 }
 0x308   : > { %v940_v40 = vadd.f32 %v892_v38, %v828_v13  ;;  %v798_v41 = vpop.trf.xlu1 }
 0x309   : > { %v926_v42 = vadd.f32 %v878_v39, %v798_v41 }
 0x30a   : > { %989 = vst.msk [vmem:[%s1576_s16 + $0xc0] sm:$0xff] %vm964_vm1, %v940_v40 }
 0x30b   : > { %975 = vst.msk [vmem:[%s1576_s16 + $0x50] sm:$0xff] %vm964_vm1, %v926_v42  ;;  %v863_v44 = vpop.trf.xlu0 }
 0x30c   : > { %v959_v45 = vadd.f32 %v911_v43, %v863_v44 }
 0x30e   : > { %1008 = vst.msk [vmem:[%s1576_s16 + $0x158] sm:$0xff] %vm964_vm1, %v959_v45 }
 0x30f   : > { %v829_v47 = vpop.trf.xlu2 }
 0x310   : > { %v941_v14 = vadd.f32 %v893_v10, %v829_v47  ;;  %v799_v48 = vpop.trf.xlu1 }
 0x311   : > { %v927_v49 = vadd.f32 %v879_v46, %v799_v48 }
 0x312   : > { %990 = vst.msk [vmem:[%s1576_s16 + $0xc8] sm:$0xff] %vm964_vm1, %v941_v14 }
 0x313   : > { %976 = vst.msk [vmem:[%s1576_s16 + $0x58] sm:$0xff] %vm964_vm1, %v927_v49  ;;  %v864_v11 = vpop.trf.xlu0 }
 0x314   : > { %v960_v51 = vadd.f32 %v912_v50, %v864_v11 }
 0x316   : > { %1009 = vst.msk [vmem:[%s1576_s16 + $0x160] sm:$0xff] %vm964_vm1, %v960_v51 }
 0x317   : > { %v830_v7 = vpop.trf.xlu2 }
 0x318   : > { %v942_v54 = vadd.f32 %v894_v52, %v830_v7  ;;  %v800_v55 = vpop.trf.xlu1 }
 0x319   : > { %v928_v56 = vadd.f32 %v880_v53, %v800_v55 }
 0x31a   : > { %991 = vst.msk [vmem:[%s1576_s16 + $0xd0] sm:$0xff] %vm964_vm1, %v942_v54 }
 0x31b   : > { %977 = vst.msk [vmem:[%s1576_s16 + $0x60] sm:$0xff] %vm964_vm1, %v928_v56  ;;  %v865_v57 = vpop.trf.xlu0 }
 0x31c   : > { %v961_v9 = vadd.f32 %v913_v5, %v865_v57 }
 0x31e   : > { %1010 = vst.msk [vmem:[%s1576_s16 + $0x168] sm:$0xff] %vm964_vm1, %v961_v9 }
 0x31f   : > { %v831_v60 = vpop.trf.xlu2 }
 0x320   : > { %v943_v61 = vadd.f32 %v895_v58, %v831_v60  ;;  %v801_v6 = vpop.trf.xlu1 }
 0x321   : > { %v929_v62 = vadd.f32 %v881_v59, %v801_v6 }
 0x322   : > { %992 = vst.msk [vmem:[%s1576_s16 + $0xd8] sm:$0xff] %vm964_vm1, %v943_v61 }
 0x323   : > { %978 = vst.msk [vmem:[%s1576_s16 + $0x68] sm:$0xff] %vm964_vm1, %v929_v62  ;;  %v866_v0 = vpop.trf.xlu0 }
 0x324   : > { %v962_v20 = vadd.f32 %v914_v63, %v866_v0 }
 0x326   : > { %1011 = vst.msk [vmem:[%s1576_s16 + $0x170] sm:$0xff] %vm964_vm1, %v962_v20 }
 0x327   : > { %v832_v3 = vpop.trf.xlu2 }
 0x328   : > { %v944_v4 = vadd.f32 %v896_v1, %v832_v3  ;;  %v802_v8 = vpop.trf.xlu1 }
 0x329   : > { %v930_v15 = vadd.f32 %v882_v2, %v802_v8 }
 0x32a   : > { %993 = vst.msk [vmem:[%s1576_s16 + $0xe0] sm:$0xff] %vm964_vm1, %v944_v4 }
 0x32b   : > { %979 = vst.msk [vmem:[%s1576_s16 + $0x70] sm:$0xff] %vm964_vm1, %v930_v15  ;;  %v867_v17 = vpop.trf.xlu0 }
 0x32c   : > { %v963_v12 = vadd.f32 %v915_v21, %v867_v17 }
 0x32e   : > { %1012 = vst.msk [vmem:[%s1576_s16 + $0x178] sm:$0xff] %vm964_vm1, %v963_v12 }
 0x32f   : > { %v833_v19 = vpop.trf.xlu2 }
 0x330   : > { %v945_v22 = vadd.f32 %v897_v16, %v833_v19  ;;  %v803_v23 = vpop.trf.xlu1 }
 0x331   : > { %v931_v24 = vadd.f32 %v883_v18, %v803_v23 }
 0x332   : > { %994 = vst.msk [vmem:[%s1576_s16 + $0xe8] sm:$0xff] %vm964_vm1, %v945_v22 }
 0x333   : > { %980 = vst.msk [vmem:[%s1576_s16 + $0x78] sm:$0xff] %vm964_vm1, %v931_v24 }
 0x337   : > { %v834_v26 = vpop.trf.xlu2 }
 0x338   : > { %v946_v27 = vadd.f32 %v898_v25, %v834_v26 }
 0x33a   : > { %995 = vst.msk [vmem:[%s1576_s16 + $0xf0] sm:$0xff] %vm964_vm1, %v946_v27 }
 0x33f   : > { %v835_v29 = vpop.trf.xlu2 }
 0x340   : > { %v947_v30 = vadd.f32 %v899_v28, %v835_v29 }
 0x342   : > { %996 = vst.msk [vmem:[%s1576_s16 + $0xf8] sm:$0xff] %vm964_vm1, %v947_v30 }
 0x343 PF: > { %p1207_p4 = scmp.ge.s32.totalorder %s1309_s12, 2  ;;  %s1059_s19 = sand.u32 1, %s1297_s30  }
 0x344   : > { %s1060_s26 = scalar_lea.sflag [#allocation3], %s1059_s19 }
 0x345   : > { %p1204_p5 = pnand %p1207_p4, %p1406_p6 }
 0x347   : > { %p1205_p7 = pneg %p1204_p5 }
 0x349   : > { %1292 = dma.done.wait (%p1205_p7), %s1060_s26, 1536  }
 0x34a   : > { %1294 = vsyncadd (%p1205_p7), %s1060_s26, 4294965760  ;;  %p20_p8 = scmp.ge.s32.totalorder %s1389_s15, 4   ;;  %s1767_s30 = smov %s1301_s10 }
 0x34b   : > { %s1768_s10 = smov %s1305_s11  ;;  %s1769_s11 = smov %s1400_s18 }
 0x34c   : > { %s1770_s12 = smov %s1389_s15  ;;  %22 = sbr.rel (!%p20_p8) target bundleno = 3 (0x3), region = 102 }
 0x351   :  { %1066 = vsyncpa [#allocation3], 1 }
 0x352   :  { %1068 = vsyncpa [#allocation3 + $0x1], 1 }

</bundles_post_ra>
